<compile_context>
chip_gen: v7x
topology: tpu7x:2x2x1
jax: 0.10.0
libtpu: 0.0.40
codegen_flags: <defaults>
</compile_context>

<pallas_src>
import jax
import jax.numpy as jnp
from jax.experimental import pallas as pl
from jax.experimental.pallas import tpu as pltpu

_LANE = 128
_MAX_TILE_COLS = 2048                     # lane-dense spatial tile upper bound
_PIPELINE_VMEM_BUDGET = 8 * 1024 * 1024   # bytes for (in+out) x double-buffer


def _depth_se_kernel(x_ref, w_ref, b_ref, o_ref):
    # x_ref: (1, C, THW) VMEM   w_ref: (C, 1) VMEM (resident)   b_ref: (1,) SMEM
    x = x_ref[0]                                   # (C, THW) f32
    w = w_ref[...]                                 # (C, 1)   f32
    # 1x1 conv over channels as a VPU weighted channel-sum (no MXU for M=1).
    h = jnp.sum(x * w, axis=0, keepdims=True) + b_ref[0]     # (1, THW) f32
    att = jax.nn.sigmoid(h)                        # (1, THW)
    o_ref[0] = (att * x).astype(o_ref.dtype)       # gate, broadcast over C


def depth_se(x_nchw, weight, bias):
    """DepthSE forward.

    x_nchw: (N, C, H, W) float32
    weight: (1, C) float32   (PyTorch Conv2d(C, 1, kernel_size=1) weight squeezed)
    bias:   (1,)   float32
    """
    N, C, H, W = x_nchw.shape
    HW = H * W

    # Lane-dense spatial tiling: pad HW up to a multiple of the tile width so
    # every block is an unmasked, 128-aligned load/store.
    hw_pad = -(-HW // _LANE) * _LANE
    per_col_bytes = C * 4 * 2 * 2  # f32 * (in + out) * double-buffer
    max_cols = max(_LANE, (_PIPELINE_VMEM_BUDGET // per_col_bytes) // _LANE * _LANE)
    thw = min(hw_pad, max_cols, _MAX_TILE_COLS)
    hw_pad = -(-hw_pad // thw) * thw
    n_tiles = hw_pad // thw

    x = x_nchw.reshape(N, C, HW)
    if hw_pad != HW:
        # Zero pad: padded columns gate to 0 and are sliced off below.
        x = jnp.pad(x, ((0, 0), (0, 0), (0, hw_pad - HW)))

    w_col = weight.reshape(C, 1).astype(jnp.float32)   # channel weights as a column
    b_vec = bias.reshape(1).astype(jnp.float32)        # scalar bias for SMEM

    cost = pl.CostEstimate(
        flops=3 * N * C * HW,
        transcendentals=N * HW,
        bytes_accessed=2 * N * C * HW * 4 + C * 4 + 4,
    )

    out = pl.pallas_call(
        _depth_se_kernel,
        out_shape=jax.ShapeDtypeStruct((N, C, hw_pad), x.dtype),
        grid_spec=pltpu.PrefetchScalarGridSpec(
            num_scalar_prefetch=0,
            grid=(N, n_tiles),
            in_specs=[
                pl.BlockSpec((1, C, thw), lambda n, s: (n, 0, s)),
                pl.BlockSpec((C, 1), lambda n, s: (0, 0)),
                pl.BlockSpec(memory_space=pltpu.MemorySpace.SMEM),
            ],
            out_specs=pl.BlockSpec((1, C, thw), lambda n, s: (n, 0, s)),
        ),
        compiler_params=pltpu.CompilerParams(
            dimension_semantics=("parallel", "parallel"),
            vmem_limit_bytes=32 * 1024 * 1024,
        ),
        cost_estimate=cost,
    )(x, w_col, b_vec)

    if hw_pad != HW:
        out = out[:, :, :HW]
    return out.reshape(N, C, H, W)


if __name__ == "__main__":
    key = jax.random.PRNGKey(0)
    k_x, k_w, k_b = jax.random.split(key, 3)

    N, C, H, W = 2, 4, 16, 16
    x = jax.random.normal(k_x, (N, C, H, W), dtype=jnp.float32)

    # Deterministic "Conv2d(channels, 1, kernel_size=1)" parameters:
    #   PyTorch weight (1, C, 1, 1) -> (1, C); bias (1,) -> (1,)
    weight = jax.random.normal(k_w, (1, C), dtype=jnp.float32) * 0.1
    bias = jax.random.normal(k_b, (1,), dtype=jnp.float32) * 0.1

    y = depth_se(x, weight, bias)
    y = jax.block_until_ready(y)

    # Pure-JAX reference (elementwise channel reduction, exact f32 — no MXU).
    h_ref = jax.nn.sigmoid(
        jnp.sum(x * weight[0][None, :, None, None], axis=1, keepdims=True)
        + bias[0])                                  # (N, 1, H, W)
    y_ref = h_ref * x
    assert jnp.allclose(y, y_ref, atol=1e-5, rtol=1e-5), "mismatch vs reference"

    print("KERNEL_OK")
</pallas_src>

<mosaic_0001>
module attributes {stable_mosaic.version = 11 : i64} {
  func.func @_depth_se_kernel(%arg0: i32, %arg1: i32, %arg2: memref<1x4x256xf32, #tpu.memory_space<vmem>>, %arg3: memref<4x1xf32, #tpu.memory_space<vmem>>, %arg4: memref<1xf32, #tpu.memory_space<smem>>, %arg5: memref<1x4x256xf32, #tpu.memory_space<vmem>>) attributes {dimension_semantics = [#tpu.dimension_semantics<parallel>, #tpu.dimension_semantics<parallel>], iteration_bounds = array<i64: 2, 1>, scalar_prefetch = 0 : i64, scratch_operands = 0 : i64, tpu.core_type = #tpu.core_type<tc>, window_params = [{transform_indices = @transform_0, window_bounds = array<i64: 1, 4, 256>}, {pipeline_mode = #tpu.pipeline_mode<synchronous>, transform_indices = @transform_1, window_bounds = array<i64: 4, 1>}, {transform_indices = @transform_2, window_bounds = array<i64: 1>}, {transform_indices = @transform_3, window_bounds = array<i64: 1, 4, 256>}]} {
    %c0 = arith.constant 0 : index
    %c0_0 = arith.constant 0 : index
    %c0_1 = arith.constant 0 : index
    %0 = vector.load %arg2[%c0, %c0_0, %c0_1] : memref<1x4x256xf32, #tpu.memory_space<vmem>>, vector<1x4x256xf32>
    %1 = vector.shape_cast %0 : vector<1x4x256xf32> to vector<4x256xf32>
    %c0_2 = arith.constant 0 : index
    %c0_3 = arith.constant 0 : index
    %2 = vector.load %arg3[%c0_2, %c0_3] : memref<4x1xf32, #tpu.memory_space<vmem>>, vector<4x1xf32>
    %3 = vector.broadcast %2 : vector<4x1xf32> to vector<4x256xf32>
    %4 = arith.mulf %1, %3 : vector<4x256xf32>
    %cst = arith.constant dense<0.000000e+00> : vector<256xf32>
    %5 = vector.multi_reduction <add>, %4, %cst [0] : vector<4x256xf32> to vector<256xf32>
    %6 = vector.shape_cast %5 : vector<256xf32> to vector<1x256xf32>
    %c0_4 = arith.constant 0 : index
    %7 = memref.load %arg4[%c0_4] : memref<1xf32, #tpu.memory_space<smem>>
    %8 = vector.broadcast %7 : f32 to vector<1x256xf32>
    %9 = arith.addf %6, %8 : vector<1x256xf32>
    %10 = arith.negf %9 : vector<1x256xf32>
    %11 = math.exp %10 : vector<1x256xf32>
    %cst_5 = arith.constant 1.000000e+00 : f32
    %12 = vector.broadcast %cst_5 : f32 to vector<1x256xf32>
    %13 = arith.addf %12, %11 : vector<1x256xf32>
    %14 = arith.divf %12, %13 : vector<1x256xf32>
    %15 = vector.broadcast %14 : vector<1x256xf32> to vector<4x256xf32>
    %16 = arith.mulf %15, %1 : vector<4x256xf32>
    %c0_6 = arith.constant 0 : index
    %c0_7 = arith.constant 0 : index
    %c0_8 = arith.constant 0 : index
    %17 = vector.load %arg5[%c0_6, %c0_7, %c0_8] : memref<1x4x256xf32, #tpu.memory_space<vmem>>, vector<1x4x256xf32>
    %18 = vector.shape_cast %17 : vector<1x4x256xf32> to vector<4x256xf32>
    %19 = vector.shape_cast %16 : vector<4x256xf32> to vector<1x4x256xf32>
    tpu.vector_store %arg5[%c0_6, %c0_7, %c0_8], %19 {strides = array<i32>} : memref<1x4x256xf32, #tpu.memory_space<vmem>>, vector<1x4x256xf32>,
    return
  }
  func.func @transform_0(%arg0: i32, %arg1: i32) -> (i32, i32, i32) {
    %c0_i32 = arith.constant 0 : i32
    %c0_i32_0 = arith.constant 0 : i32
    return %arg0, %c0_i32, %arg1 : i32, i32, i32
  }
  func.func @transform_1(%arg0: i32, %arg1: i32) -> (i32, i32) {
    %c0_i32 = arith.constant 0 : i32
    %c0_i32_0 = arith.constant 0 : i32
    %c0_i32_1 = arith.constant 0 : i32
    return %c0_i32, %c0_i32_0 : i32, i32
  }
  func.func @transform_2(%arg0: i32, %arg1: i32) -> i32 {
    %c0_i32 = arith.constant 0 : i32
    %c0_i32_0 = arith.constant 0 : i32
    return %c0_i32 : i32
  }
  func.func @transform_3(%arg0: i32, %arg1: i32) -> (i32, i32, i32) {
    %c0_i32 = arith.constant 0 : i32
    %c0_i32_0 = arith.constant 0 : i32
    return %arg0, %c0_i32, %arg1 : i32, i32, i32
  }
}

</mosaic_0001>

<bundles_post_ra>
// kernel: tpu_custom_call.1
= control target key start
LH: loop header
LB: loop body
LE: loop exit
PB: predicated region body
PF: predicated region fallthrough
CT: control target
= control target key end

     0   :  { %s781_s0 = inlined_call_operand.hbm [shape: f32[2,4,256], index: 0, kind: input, shape index: {}]   ;;  %s782_s1 = inlined_call_operand.vmem [shape: f32[4,1], index: 1, kind: input, shape index: {}]   ;;  %s783_s2 = inlined_call_operand.<no memory space> [shape: f32[1], index: 2, kind: input, shape index: {}]   ;;  %s784_s3 = inlined_call_operand.hbm [shape: f32[2,4,256], index: 3, kind: output, shape index: {}]  }
   0x1   :  { %8 = sst [smem:[#allocation2]] %s783_s2 }
   0x2   :  { %9 = vsyncpa [#allocation4], 0 }
   0x3   :  { %11 = vsyncpa [#allocation4 + $0x1], 0 }
   0x4   :  { %12 = vsyncpa [#allocation5], 0 }
   0x5   :  { %14 = vsyncpa [#allocation5 + $0x1], 0  ;;  %s602_s14 = smov 0   ;;  %s604_s15 = smov 0  }
   0x6   :  { %s606_s16 = smov 0   ;;  %s608_s17 = smov 0  }
   0x7   :  { %s610_s18 = smov 0   ;;  %s612_s19 = smov 0  }
   0x8 LB: > { %s368_s2 = sadd.s32 4294967295, %s573_s19   ;;  %s369_s20 = sadd.s32 4294967294, %s573_s19   ;;  %s573_s19 = sphi %s612_s19, %s20_s19   ;;  %s569_s18 = sphi %s610_s18, %s800_s18   ;;  %s565_s17 = sphi %s608_s17, %s799_s17   ;;  %s561_s16 = sphi %s606_s16, %s798_s16   ;;  %s557_s15 = sphi %s604_s15, %s797_s15   ;;  %s553_s14 = sphi %s602_s14, %s796_s14  }
   0x9   : > { %s32_s21 = sadd.s32 1, %s569_s18  ;;  %s41_s22 = sadd.s32 1, %s561_s16 }
   0xa   : > { %p34_p0 = scmp.ge.s32.totalorder %s32_s21, 2  ;;  %p48_p1 = scmp.ne.s32.totalorder %s561_s16, %s557_s15 }
   0xb   : > { %p49_p2 = scmp.eq.s32.totalorder %s573_s19, 0  ;;  %p54_p3 = scmp.ne.s32.totalorder %s557_s15, %s553_s14 }
   0xc   : > { %s802_s21 = smov (%p34_p0, %s32_s21), 0  ;;  %p55_p5 = scmp.eq.s32.totalorder %s368_s2, 0 }
   0xd   : > { %p643_p4 = por %p49_p2, %p48_p1  ;;  %s36_s24 = ssub.s32 %s569_s18, %s802_s21 }
   0xe   : > { %p122_p6 = scmp.eq.s32.totalorder %s368_s2, 1  ;;  %p39_p7 = scmp.eq.s32.totalorder %s36_s24, 0 }
   0xf   : > { %p649_p8 = por %p55_p5, %p54_p3  ;;  %p128_p10 = scmp.eq.s32.totalorder %s369_s20, 1 }
  0x10   : > { %p653_p9 = por %p122_p6, %p48_p1  ;;  %p399_p13 = scmp.lt.s32.totalorder %s573_s19, 2 }
  0x11   : > { %s658_s27 = scalar_select %p39_p7, %s561_s16, %s41_s22  }
  0x12   : > { %s788_s26 = scalar_select %p653_p9, 1, 0 }
  0x13   : > { %p660_p11 = por %p128_p10, %p54_p3  ;;  %s154_s29 = sand.u32 1, %s561_s16  }
  0x14   : > { %s372_s30 = sshll.u32 %s154_s29, 3  ;;  %s385_s4 = sshll.u32 %s569_s18, 7 }
  0x15   : > { %s789_s28 = scalar_select %p660_p11, 1, 0 }
  0x16   : > { %s671_s7 = scalar_lea.hbm %s781_s0, %s385_s4  ;;  %s158_s8 = scalar_lea.vmem [#allocation3], %s372_s30 }
  0x17   : > { %s168_s9 = sshll.u32 %s158_s8, 4  ;;  %p677_p0 = pnand %p399_p13, %p643_p4  ;;  %s673_s9 = int_to_ptr.vmem [resolvable:$true] %s168_s9 }
  0x18   : > { %s155_s11 = scalar_lea.sflag [#allocation4], %s154_s29  ;;  %s461_s12 = scalar_lea.hbm %s671_s7, 128 }
  0x19   : > { %p462_p3 = scmp.ne.s32.totalorder %s671_s7, %s461_s12  ;;  %p463_p5 = pneg %p677_p0 }
  0x1a   : > { %s466_s20 = scalar_lea.hbm %s781_s0, 256  ;;  %p467_p4 = scmp.lt.u32.totalorder %s671_s7, %s781_s0 }
  0x1b   : > { %p464_p6 = pnand %p463_p5, %p462_p3  ;;  %p468_p10 = scmp.lt.u32.totalorder %s466_s20, %s461_s12 }
  0x1c   : > { %p470_p12 = scmp.lt.u32.totalorder %s461_s12, %s671_s7 }
  0x1d   : > { %p465_p7 = pneg %p464_p6  ;;  %p469_p13 = por %p468_p10, %p467_p4 }
  0x1f   : > { %p471_p1 = por %p470_p12, %p469_p13 }
  0x21   : > { %p472_p2 = pnand %p471_p1, %p465_p7 }
  0x23   : > { %475 = shalt.err (!%p472_p2)
}
  0x24   : > { %s476_s24 = scalar_lea.vmem %s673_s9, 128  ;;  %s575_s29 = smov [#allocation3]  }
  0x25   : > { %p477_p3 = scmp.ne.s32.totalorder %s673_s9, %s476_s24  ;;  %s481_s30 = sshll.u32 %s575_s29, 4  ;;  %s482_s30 = int_to_ptr.vmem [resolvable:$false] %s481_s30 }
  0x26   : > { %s483_s4 = scalar_lea.vmem %s482_s30, 256  ;;  %p484_p9 = scmp.lt.s32.totalorder %s673_s9, %s482_s30 }
  0x27   : > { %p479_p6 = pnand %p477_p3, %p463_p5  ;;  %p485_p4 = scmp.lt.s32.totalorder %s483_s4, %s476_s24 }
  0x29   : > { %p480_p11 = pneg %p479_p6  ;;  %p486_p10 = por %p485_p4, %p484_p9 }
  0x2b   : > { %p487_p12 = pnand %p486_p10, %p480_p11 }
  0x2d   : > { %490 = shalt.err (!%p487_p12)
}
  0x2e   : > { %394 = dma.hbm_to_vmem [thread:$0]  (!%p677_p0), %s671_s7, 128, %s673_s9, %s155_s11  }
  0x2f   : > { %p791_p1 = scmp.lt.s32.totalorder %s573_s19, 3  ;;  %p792_p2 = scmp.ge.s32.totalorder %s573_s19, 1 }
  0x31   : > { %p174_p5 = pnand %p792_p2, %p791_p1 }
  0x32   : > { %s713_s5 = sand.u32 (!%p174_p5), 1, %s557_s15  }
  0x33   : > { %177 = sbr.rel (%p174_p5) target bundleno = 254 (0xfe), region = 32  ;;  %s376_s6 = sshll.u32 (!%p174_p5), %s713_s5, 3 }
  0x34   : > { %s180_s8 = scalar_lea.sflag (!%p174_p5), [#allocation4], %s713_s5  ;;  %s183_s10 = scalar_lea.vmem (!%p174_p5), [#allocation3], %s376_s6 }
  0x3a   : > { %544 = dma.done.wait (%p649_p8), %s180_s8, 128  }
  0x3b   : > { %546 = vsyncadd (%p649_p8), %s180_s8, 4294967168  ;;  %v576_v0 = vmov 0   ;;  %v209_v1 = vld [vmem:[%s782_s1] sm:$0xf]  ;;  %v577_v2 = vmov 839922192   ;;  %v217_v4 = vlaneseq }
  0x3c   : > { %451 = vset.pattern.permute.xlu0 %v576_v0  ;;  %v215_v3 = vunpack.c.l.s4 %v577_v2  ;;  %v208_v9 = vld [vmem:[%s183_s10] sm:$0xff]  ;;  %vm226_vm0 = vcmask 1043456   ;;  %s241_s25 = sld [smem:[#allocation2]]  ;;  %s386_s11 = sshll.u32 %s565_s17, 7 }
  0x3d   : > { %212 = vperm.xlu0 %451, %v209_v1   ;;  %v218_v6 = vshrl.u32 %v217_v4, 7  ;;  %v258_v36 = vcombine.high %v208_v9, %v208_v9  ;;  %s205_s12 = scalar_lea.vmem [#allocation6], %s376_s6  ;;  %s732_s22 = scalar_lea.hbm %s784_s3, %s386_s11 }
  0x3e   : > { %v216_v5 = vunpack.c.0.s8 %v215_v3  ;;  %s284_s13 = sshll.u32 %s205_s12, 4  ;;  %s268_s23 = scalar_lea.sflag [#allocation5], %s713_s5  ;;  %s734_s13 = int_to_ptr.vmem [resolvable:$true] %s284_s13 }
  0x3f   : > { %s491_s24 = scalar_lea.vmem %s734_s13, 128  ;;  %p793_p9 = scmp.ne.s32.totalorder %s788_s26, 0 }
  0x40   : > { %v219_v7 = vsub.s32 %v216_v5, %v218_v6  ;;  %p492_p8 = scmp.ne.s32.totalorder %s734_s13, %s491_s24  ;;  %s578_s17 = smov [#allocation6]  }
  0x41   : > { %s495_s29 = sshll.u32 %s578_s17, 4  ;;  %s496_s29 = int_to_ptr.vmem [resolvable:$false] %s495_s29 }
  0x42   : > { %v242_v24 = vstv %s241_s25  ;;  %p493_p11 = pnand %p492_p8, %p793_p9  ;;  %s497_s30 = scalar_lea.vmem %s496_s29, 256 }
  0x43   : > { %p498_p7 = scmp.lt.s32.totalorder %s734_s13, %s496_s29  ;;  %p499_p13 = scmp.lt.s32.totalorder %s497_s30, %s491_s24 }
  0x44   : > { %p494_p0 = pneg %p493_p11 }
  0x45   : > { %p500_p3 = por %p499_p13, %p498_p7 }
  0x47   : > { %p501_p6 = pnand %p500_p3, %p494_p0 }
  0xbc   : > { %v213_v8 = vpop.permute.xlu0 %212 }
  0xbd   : > { %v220_v10 = vrot.slane %v213_v8, %v219_v7 }
  0xbf   : > { %v222_v11 = vmul.f32 %v220_v10, %v208_v9 }
  0xc1   : > { %v224_v12 = vcombine.high %v222_v11, %v222_v11  ;;  %v227_v13 = vsel %vm226_vm0, %v222_v11, 0.0 }
  0xc2   : > { %v228_v14 = vrot.slane %v227_v13, 4 }
  0xc3   : > { %v234_v15 = vsel %vm226_vm0, %v224_v12, 0.0 }
  0xc4   : > { %v229_v16 = vadd.f32 %v228_v14, %v227_v13  ;;  %v235_v17 = vrot.slane %v234_v15, 4 }
  0xc6   : > { %v230_v18 = vrot.slane %v229_v16, 2  ;;  %v236_v19 = vadd.f32 %v235_v17, %v234_v15 }
  0xc8   : > { %v231_v20 = vadd.f32 %v230_v18, %v229_v16  ;;  %v237_v21 = vrot.slane %v236_v19, 2 }
  0xca   : > { %v232_v22 = vrot.slane %v231_v20, 1  ;;  %v238_v23 = vadd.f32 %v237_v21, %v236_v19 }
  0xcc   : > { %v233_v25 = vadd.f32 %v232_v22, %v231_v20  ;;  %v239_v26 = vrot.slane %v238_v23, 1 }
  0xce   : > { %v240_v27 = vadd.f32 %v239_v26, %v238_v23  ;;  %v243_v28 = vadd.f32 %v242_v24, %v233_v25 }
  0xd0   : > { %v244_v29 = vadd.f32 %v242_v24, %v240_v27  ;;  %v378_v30 = vmul.f32 -1.442695, %v243_v28 }
  0xd2   : > { %453 = vpow2.f32 %v378_v30  ;;  %v379_v31 = vmul.f32 -1.442695, %v244_v29 }
  0xd4   : > { %455 = vpow2.f32 %v379_v31 }
  0xdc   : > { %v454_v32 = vpop.eup %453 }
  0xdd   : > { %v251_v33 = vadd.f32 1.0, %v454_v32 }
  0xde   : > { %v456_v34 = vpop.eup %455 }
  0xdf   : > { %v252_v35 = vadd.f32 1.0, %v456_v34  ;;  %457 = vrcp.f32 %v251_v33 }
  0xe1   : > { %459 = vrcp.f32 %v252_v35 }
  0xe9   : > { %v458_v37 = vpop.eup %457 }
  0xea   : > { %v260_v39 = vmul.f32 %v458_v37, %v208_v9 }
  0xeb   : > { %v460_v38 = vpop.eup %459 }
  0xec   : > { %v261_v40 = vmul.f32 %v460_v38, %v258_v36 }
  0xee   : > { %v264_v41 = vcombine.low %v260_v39, %v261_v40 }
  0xf0   : > { %266 = vst [vmem:[%s205_s12] sm:$0xff] %v264_v41 }
  0xf1   : > { %504 = shalt.err (!%p501_p6)
}
  0xf2   : > { %s505_s4 = scalar_lea.hbm %s732_s22, 128  ;;  %s509_s8 = scalar_lea.hbm %s784_s3, 256 }
  0xf3   : > { %p506_p4 = scmp.ne.s32.totalorder %s732_s22, %s505_s4  ;;  %p510_p1 = scmp.lt.u32.totalorder %s732_s22, %s784_s3 }
  0xf4   : > { %p511_p2 = scmp.lt.u32.totalorder %s509_s8, %s505_s4  ;;  %p513_p8 = scmp.lt.u32.totalorder %s505_s4, %s732_s22 }
  0xf5   : > { %p507_p10 = pnand %p506_p4, %p793_p9 }
  0xf6   : > { %p512_p5 = por %p511_p2, %p510_p1 }
  0xf7   : > { %p508_p12 = pneg %p507_p10 }
  0xf8   : > { %p514_p11 = por %p513_p8, %p512_p5 }
  0xfa   : > { %p515_p0 = pnand %p514_p11, %p508_p12 }
  0xfc   : > { %518 = shalt.err (!%p515_p0)
}
  0xfd   : > { %389 = dma.vmem_to_hbm [thread:$0]  (%p793_p9), %s734_s13, 128, %s732_s22, %s268_s23  }
  0xfe PF: > { %s296_s9 = sand.u32 1, %s553_s14   ;;  %p794_p7 = scmp.ne.s32.totalorder %s789_s28, 0 }
  0xff   : > { %p795_p13 = scmp.ge.s32.totalorder %s573_s19, 2  ;;  %s297_s25 = scalar_lea.sflag [#allocation5], %s296_s9 }
 0x101   : > { %p396_p3 = pnand %p795_p13, %p794_p7 }
 0x103   : > { %548 = dma.done.wait (!%p396_p3), %s297_s25, 128  }
 0x104   : > { %550 = vsyncadd (!%p396_p3), %s297_s25, 4294967168  ;;  %s20_s19 = sadd.s32 1, %s573_s19   ;;  %s796_s14 = smov %s557_s15 }
 0x105   : > { %p17_p6 = scmp.ge.s32.totalorder %s20_s19, 4   ;;  %s797_s15 = smov %s561_s16 }
 0x106   : > { %s798_s16 = smov %s658_s27  ;;  %s799_s17 = smov %s569_s18 }
 0x107   : > { %s800_s18 = smov %s802_s21  ;;  %19 = sbr.rel (!%p17_p6) target bundleno = 8 (0x8), region = 77 }
 0x10e   :  { %302 = vsyncpa [#allocation4], 1 }
 0x10f   :  { %304 = vsyncpa [#allocation4 + $0x1], 1 }
 0x110   :  { %305 = vsyncpa [#allocation5], 1 }
 0x111   :  { %307 = vsyncpa [#allocation5 + $0x1], 1 }

</bundles_post_ra>
